<compile_context>
chip_gen: v5e
topology: v5e:2x2
jax: 0.10.0
libtpu: 0.0.40
codegen_flags: <defaults>
</compile_context>

<pallas_src>
import functools

import jax
import jax.numpy as jnp
from jax.experimental import pallas as pl
from jax.experimental.pallas import tpu as pltpu

LANE = 128  # action-dim lane padding target (MXU / vst lane width)


def actor_kernel(x_ref, w1_ref, b1_ref, w2_ref, b2_ref, o_ref):
    # x:  [TB, S] f32     w1: [S, H] (f32 or bf16)   b1: [1, H] f32
    # w2: [H, A_pad]      b2: [1, A_pad] f32         o:  [TB, A_pad]
    x = x_ref[...].astype(w1_ref.dtype)            # in-kernel operand cast (VPU, cheap)
    h = jnp.dot(x, w1_ref[...], preferred_element_type=jnp.float32) + b1_ref[...]
    h = jnp.maximum(h, 0.0)                        # ReLU in f32
    h = h.astype(w2_ref.dtype)                     # cast only the 2nd-matmul operand
    y = jnp.dot(h, w2_ref[...], preferred_element_type=jnp.float32) + b2_ref[...]
    o_ref[...] = jnp.tanh(y).astype(o_ref.dtype)   # tanh output, optional bf16 store


def _round_up(n, m):
    return -(-n // m) * m


def init_actor_params(key, state_size, action_size, fc_units=256):
    """Deterministic init mirroring the PyTorch module's reset_parameters()."""
    k1, k2, k3, k4 = jax.random.split(key, 4)
    # fc1.weight: uniform(-1/sqrt(fan), 1/sqrt(fan)); hidden_init uses
    # weight.size()[0] = fc_units (as in the reference module).
    lim1 = 1.0 / jnp.sqrt(jnp.float32(fc_units))
    w1 = jax.random.uniform(k1, (fc_units, state_size), jnp.float32, -lim1, lim1)
    # fc1.bias: PyTorch default uniform(-1/sqrt(in_features), 1/sqrt(in_features))
    bl1 = 1.0 / jnp.sqrt(jnp.float32(state_size))
    b1 = jax.random.uniform(k2, (1, fc_units), jnp.float32, -bl1, bl1)
    # fc2.weight: uniform(-3e-3, 3e-3); fc2.bias keeps the default init.
    w2 = jax.random.uniform(k3, (action_size, fc_units), jnp.float32, -3e-3, 3e-3)
    bl2 = 1.0 / jnp.sqrt(jnp.float32(fc_units))
    b2 = jax.random.uniform(k4, (1, action_size), jnp.float32, -bl2, bl2)
    # pre-transpose weights to [in, out] for the kernel
    return w1.T, b1, w2.T, b2


def prepare_params(w1_t, b1, w2_t, b2, *, compute_dtype=jnp.bfloat16):
    """One-time parameter prep (hoisted out of the per-call forward).

    * zero-pads the action dim of w2/b2 to 128 lanes (lane-dense output /
      full 128-lane MXU column block),
    * casts the two matmul weight operands to compute_dtype (bf16 default:
      native MXU operand type on v5e/v6e/v7x); biases stay f32.
    Returns (w1, b1, w2_pad, b2_pad, action_size).
    """
    H, A = w2_t.shape
    A_pad = max(LANE, _round_up(A, LANE))
    w2_p = jnp.zeros((H, A_pad), jnp.float32).at[:, :A].set(w2_t)
    b2_p = jnp.zeros((1, A_pad), jnp.float32).at[:, :A].set(b2)
    return (w1_t.astype(compute_dtype), b1.astype(jnp.float32),
            w2_p.astype(compute_dtype), b2_p.astype(jnp.float32), A)


def _tile_and_pad(B, block_b, sublane):
    """Pick the batch tile TB and padded batch B_pad.

    Tile sizing is overhead-driven (not VMEM-driven: resident weights are
    ~160 KiB and per-tile activations ~TB*0.7 KiB, far below even v7x's
    64 MiB VMEM), so go big — but keep >=2 grid steps whenever the batch
    allows it so v7x can shard the 'parallel' batch axis across its 2 TCs.
    """
    B_al = _round_up(max(B, 1), sublane)
    tb = min(block_b, B_al)
    if B_al >= 2 * sublane:
        tb = min(tb, _round_up(B_al // 2, sublane))
    tb = max(tb, sublane)
    return tb, _round_up(B, tb)


@functools.partial(jax.jit,
                   static_argnames=("action_size", "block_b", "out_dtype", "unpad"))
def actor_forward(state, w1, b1, w2, b2, *, action_size=None, block_b=512,
                  out_dtype=jnp.float32, unpad=True):
    """Pallas forward of the Actor MLP.

    state: [B, S] f32; (w1, b1, w2, b2) from prepare_params (w2/b2 lane-padded).
    Returns [B, action_size] (unpad=True) or the padded [B_pad, A_pad] block
    (unpad=False; slice at the consumer to skip the extra copy pass).
    """
    B, S = state.shape
    H = w1.shape[1]
    A_pad = w2.shape[1]

    # sublane rounding follows the matmul operand dtype (bf16 packs 2 rows/sublane)
    sublane = 16 if jnp.dtype(w1.dtype).itemsize == 2 else 8
    TB, B_pad = _tile_and_pad(B, block_b, sublane)

    x = state
    if B_pad != B:
        x = jnp.pad(state, ((0, B_pad - B), (0, 0)))

    grid = (B_pad // TB,)
    out = pl.pallas_call(
        actor_kernel,
        out_shape=jax.ShapeDtypeStruct((B_pad, A_pad), out_dtype),
        grid_spec=pltpu.PrefetchScalarGridSpec(
            num_scalar_prefetch=0,
            grid=grid,
            in_specs=[
                pl.BlockSpec((TB, S), lambda i: (i, 0)),   # activations: tiled over batch
                # weights/biases: constant block index -> stay resident in VMEM
                # across grid steps (only DMA'd once).
                pl.BlockSpec((S, H), lambda i: (0, 0)),
                pl.BlockSpec((1, H), lambda i: (0, 0)),
                pl.BlockSpec((H, A_pad), lambda i: (0, 0)),
                pl.BlockSpec((1, A_pad), lambda i: (0, 0)),
            ],
            out_specs=pl.BlockSpec((TB, A_pad), lambda i: (i, 0)),  # lane-dense store
        ),
        compiler_params=pltpu.CompilerParams(
            dimension_semantics=("parallel",),             # megacore split on v7x
        ),
        # TODO(synk): weight/bias specs could use pipeline_mode=pl.Buffered(1)
        # to drop their second (unused) VMEM buffer; ~160 KiB saved, negligible
        # here, so left at the default to keep the lowering maximally portable.
    )(x, w1, b1, w2, b2)

    if unpad:
        out = out[:B]
        if action_size is not None:
            out = out[:, :action_size]
    return out


def _reference(state, w1_t, b1, w2_t, b2):
    return jnp.tanh(jnp.maximum(state @ w1_t + b1, 0.0) @ w2_t + b2)


if __name__ == "__main__":
    state_size, action_size, fc_units = 32, 4, 256

    key = jax.random.PRNGKey(0)
    k_x, k_big, k_p = jax.random.split(key, 3)
    w1_t, b1, w2_t, b2 = init_actor_params(k_p, state_size, action_size, fc_units)

    # --- f32 path: tight numerical check ---------------------------------
    p32 = prepare_params(w1_t, b1, w2_t, b2, compute_dtype=jnp.float32)
    w1_32, b1_32, w2_32, b2_32, A = p32

    state = jax.random.normal(k_x, (2, state_size), jnp.float32)
    out = actor_forward(state, w1_32, b1_32, w2_32, b2_32, action_size=A)
    jax.block_until_ready(out)
    ref = _reference(state, w1_t, b1, w2_t, b2)
    assert out.shape == (2, action_size)
    assert jnp.allclose(out, ref, atol=1e-5), "f32 small-batch mismatch vs reference"

    state_big = jax.random.normal(k_big, (256, state_size), jnp.float32)
    out_big = actor_forward(state_big, w1_32, b1_32, w2_32, b2_32, action_size=A)
    jax.block_until_ready(out_big)
    ref_big = _reference(state_big, w1_t, b1, w2_t, b2)
    assert out_big.shape == (256, action_size)
    assert jnp.allclose(out_big, ref_big, atol=1e-5), "f32 batched mismatch vs reference"

    # --- bf16 operand path (default for v5e/v6e/v7x MXU), f32 accumulation.
    # Padded bf16 output + consumer-side slice to trim the dominant HBM stream.
    pbf = prepare_params(w1_t, b1, w2_t, b2, compute_dtype=jnp.bfloat16)
    w1_bf, b1_bf, w2_bf, b2_bf, _ = pbf
    out_bf_pad = actor_forward(state_big, w1_bf, b1_bf, w2_bf, b2_bf,
                               out_dtype=jnp.bfloat16, unpad=False)
    jax.block_until_ready(out_bf_pad)
    out_bf = out_bf_pad[:256, :action_size].astype(jnp.float32)
    assert jnp.allclose(out_bf, ref_big, atol=2e-2), "bf16 batched mismatch vs reference"

    print("KERNEL_OK")
</pallas_src>

<mosaic_0001>
module attributes {stable_mosaic.version = 11 : i64} {
  func.func @actor_kernel(%arg0: i32, %arg1: memref<8x32xf32, #tpu.memory_space<vmem>>, %arg2: memref<32x256xf32, #tpu.memory_space<vmem>>, %arg3: memref<1x256xf32, #tpu.memory_space<vmem>>, %arg4: memref<256x128xf32, #tpu.memory_space<vmem>>, %arg5: memref<1x128xf32, #tpu.memory_space<vmem>>, %arg6: memref<8x128xf32, #tpu.memory_space<vmem>>) attributes {dimension_semantics = [#tpu.dimension_semantics<parallel>], iteration_bounds = array<i64: 1>, scalar_prefetch = 0 : i64, scratch_operands = 0 : i64, tpu.core_type = #tpu.core_type<tc>, window_params = [{transform_indices = @transform_0, window_bounds = array<i64: 8, 32>}, {pipeline_mode = #tpu.pipeline_mode<synchronous>, transform_indices = @transform_1, window_bounds = array<i64: 32, 256>}, {pipeline_mode = #tpu.pipeline_mode<synchronous>, transform_indices = @transform_2, window_bounds = array<i64: 1, 256>}, {pipeline_mode = #tpu.pipeline_mode<synchronous>, transform_indices = @transform_3, window_bounds = array<i64: 256, 128>}, {pipeline_mode = #tpu.pipeline_mode<synchronous>, transform_indices = @transform_4, window_bounds = array<i64: 1, 128>}, {transform_indices = @transform_5, window_bounds = array<i64: 8, 128>}]} {
    %c0 = arith.constant 0 : index
    %c0_0 = arith.constant 0 : index
    %0 = vector.load %arg1[%c0, %c0_0] : memref<8x32xf32, #tpu.memory_space<vmem>>, vector<8x32xf32>
    %c0_1 = arith.constant 0 : index
    %c0_2 = arith.constant 0 : index
    %1 = vector.load %arg2[%c0_1, %c0_2] : memref<32x256xf32, #tpu.memory_space<vmem>>, vector<32x256xf32>
    %cst = arith.constant dense<0.000000e+00> : vector<8x256xf32>
    %2 = tpu.matmul %0, %1, %cst {dimension_numbers = #tpu.dot_dimension_numbers<[1], [0], [0], [1], [0, 0, 1, 1], [], []>} : vector<8x32xf32>, vector<32x256xf32>, vector<8x256xf32> -> vector<8x256xf32>
    %c0_3 = arith.constant 0 : index
    %c0_4 = arith.constant 0 : index
    %3 = vector.load %arg3[%c0_3, %c0_4] : memref<1x256xf32, #tpu.memory_space<vmem>>, vector<1x256xf32>
    %4 = vector.broadcast %3 : vector<1x256xf32> to vector<8x256xf32>
    %5 = arith.addf %2, %4 : vector<8x256xf32>
    %cst_5 = arith.constant 0.000000e+00 : f32
    %6 = vector.broadcast %cst_5 : f32 to vector<8x256xf32>
    %7 = arith.maximumf %5, %6 : vector<8x256xf32>
    %c0_6 = arith.constant 0 : index
    %c0_7 = arith.constant 0 : index
    %8 = vector.load %arg4[%c0_6, %c0_7] : memref<256x128xf32, #tpu.memory_space<vmem>>, vector<256x128xf32>
    %cst_8 = arith.constant dense<0.000000e+00> : vector<8x128xf32>
    %9 = tpu.matmul %7, %8, %cst_8 {dimension_numbers = #tpu.dot_dimension_numbers<[1], [0], [0], [1], [0, 0, 1, 1], [], []>} : vector<8x256xf32>, vector<256x128xf32>, vector<8x128xf32> -> vector<8x128xf32>
    %c0_9 = arith.constant 0 : index
    %c0_10 = arith.constant 0 : index
    %10 = vector.load %arg5[%c0_9, %c0_10] : memref<1x128xf32, #tpu.memory_space<vmem>>, vector<1x128xf32>
    %11 = vector.broadcast %10 : vector<1x128xf32> to vector<8x128xf32>
    %12 = arith.addf %9, %11 : vector<8x128xf32>
    %13 = math.tanh %12 : vector<8x128xf32>
    %c0_11 = arith.constant 0 : index
    %c0_12 = arith.constant 0 : index
    %14 = vector.load %arg6[%c0_11, %c0_12] : memref<8x128xf32, #tpu.memory_space<vmem>>, vector<8x128xf32>
    tpu.vector_store %arg6[%c0_11, %c0_12], %13 {strides = array<i32>} : memref<8x128xf32, #tpu.memory_space<vmem>>, vector<8x128xf32>,
    return
  }
  func.func @transform_0(%arg0: i32) -> (i32, i32) {
    %c0_i32 = arith.constant 0 : i32
    %c0_i32_0 = arith.constant 0 : i32
    return %arg0, %c0_i32 : i32, i32
  }
  func.func @transform_1(%arg0: i32) -> (i32, i32) {
    %c0_i32 = arith.constant 0 : i32
    %c0_i32_0 = arith.constant 0 : i32
    %c0_i32_1 = arith.constant 0 : i32
    return %c0_i32, %c0_i32_0 : i32, i32
  }
  func.func @transform_2(%arg0: i32) -> (i32, i32) {
    %c0_i32 = arith.constant 0 : i32
    %c0_i32_0 = arith.constant 0 : i32
    %c0_i32_1 = arith.constant 0 : i32
    return %c0_i32, %c0_i32_0 : i32, i32
  }
  func.func @transform_3(%arg0: i32) -> (i32, i32) {
    %c0_i32 = arith.constant 0 : i32
    %c0_i32_0 = arith.constant 0 : i32
    %c0_i32_1 = arith.constant 0 : i32
    return %c0_i32, %c0_i32_0 : i32, i32
  }
  func.func @transform_4(%arg0: i32) -> (i32, i32) {
    %c0_i32 = arith.constant 0 : i32
    %c0_i32_0 = arith.constant 0 : i32
    %c0_i32_1 = arith.constant 0 : i32
    return %c0_i32, %c0_i32_0 : i32, i32
  }
  func.func @transform_5(%arg0: i32) -> (i32, i32) {
    %c0_i32 = arith.constant 0 : i32
    %c0_i32_0 = arith.constant 0 : i32
    return %arg0, %c0_i32 : i32, i32
  }
}

</mosaic_0001>

<bundles_post_ra>
// kernel: actor_forward.1
= control target key start
LH: loop header
LB: loop body
LE: loop exit
PB: predicated region body
PF: predicated region fallthrough
CT: control target
= control target key end

     0   :  { %10 = vsyncpa [#allocation3], 0  ;;  %s314_s0 = inlined_call_operand.vmem [shape: f32[8,32], index: 0, kind: input, shape index: {}]   ;;  %s315_s1 = inlined_call_operand.hbm [shape: f32[32,256], index: 1, kind: input, shape index: {}]   ;;  %s316_s2 = inlined_call_operand.vmem [shape: f32[1,256], index: 2, kind: input, shape index: {}]   ;;  %s317_s3 = inlined_call_operand.hbm [shape: f32[256,128], index: 3, kind: input, shape index: {}]   ;;  %s318_s4 = inlined_call_operand.vmem [shape: f32[1,128], index: 4, kind: input, shape index: {}]   ;;  %s319_s5 = inlined_call_operand.vmem [shape: f32[8,128], index: 5, kind: output, shape index: {}]  }
   0x1   :  { %s18_s20 = sshll.u32 %s315_s1, 4  ;;  %s19_s20 = int_to_ptr.hbm [resolvable:$true] %s18_s20 }
   0x2   :  { %11 = vsyncpa [#allocation5], 0  ;;  %s260_s21 = smov [#allocation2]   ;;  %s33_s25 = sshll.u32 %s317_s3, 4  ;;  %s34_s25 = int_to_ptr.hbm [resolvable:$true] %s33_s25 }
   0x3   :  { %s20_s22 = sshll.u32 %s260_s21, 4  ;;  %s261_s26 = smov 256   ;;  %s21_s22 = int_to_ptr.vmem [resolvable:$true] %s20_s22 }
   0x4   :  { %s262_s27 = smov 16   ;;  %s263_s28 = smov [#allocation4]  }
   0x5   :  { %26 = dma.hbm_to_vmem [thread:$0]  %s19_s20, 1024, %s21_s22, [#allocation3], %s261_s26, %s261_s26, %s262_s27  }
   0x6   :  { %s35_s29 = sshll.u32 %s263_s28, 4  ;;  %s264_s30 = smov 128   ;;  %s36_s29 = int_to_ptr.vmem [resolvable:$true] %s35_s29 }
   0x7   :  { %s265_s6 = smov 8  }
   0x8   :  { %41 = dma.hbm_to_vmem [thread:$0]  %s34_s25, 4096, %s36_s29, [#allocation5], %s264_s30, %s264_s30, %s265_s6  }
   0x9   :  { %256 = dma.done.wait [#allocation3], 1024  }
   0xa   :  { %257 = vsyncadd [#allocation3], 4294966272 }
   0xb   :  { %258 = dma.done.wait [#allocation5], 4096  }
   0xc   :  { %259 = vsyncadd [#allocation5], 4294963200  ;;  %v59_v0 = vld [vmem:[#allocation2 + $0x30] sm:$0xff]  ;;  %v57_v1 = vld [vmem:[#allocation2 + $0x20] sm:$0xff]  ;;  %vm67_vm0 = vcmask 261120  }
   0xd   :  { %v60_v2 = vld [vmem:[#allocation2 + $0x38] sm:$0xff]  ;;  %83 = vmatpush.msra.mxu0 %v59_v0  ;;  %v58_v3 = vld [vmem:[#allocation2 + $0x28] sm:$0xff]  ;;  %v55_v4 = vld [vmem:[#allocation2 + $0x10] sm:$0xff] }
   0xe   :  { %103 = vmatpush.msra.mxu1 %v60_v2  ;;  %v56_v5 = vld [vmem:[#allocation2 + $0x18] sm:$0xff]  ;;  %v127_v7 = vld [vmem:[#allocation4 + $0x70] sm:$0xff]  ;;  %v53_v9 = vld [vmem:[#allocation2] sm:$0xff] }
   0xf   :  { %84 = vmatpush.msra.mxu0 %v57_v1  ;;  %v128_v6 = vld [vmem:[#allocation4 + $0x78] sm:$0xff]  ;;  %v54_v10 = vld [vmem:[#allocation2 + $0x8] sm:$0xff]  ;;  %v143_v11 = vld [vmem:[#allocation4 + $0xf0] sm:$0xff] }
  0x10   :  { %104 = vmatpush.msra.mxu1 %v58_v3  ;;  %v144_v8 = vld [vmem:[#allocation4 + $0xf8] sm:$0xff]  ;;  %149 = vmatpush.msra.mxu2 %v128_v6  ;;  %v52_v12 = vld [vmem:[%s314_s0] sm:$0xff]  ;;  %v126_v13 = vld [vmem:[#allocation4 + $0x68] sm:$0xff] }
  0x11   :  { %169 = vmatpush.msra.mxu3 %v144_v8  ;;  %85 = vmatpush.msra.mxu0 %v55_v4  ;;  %v142_v14 = vld [vmem:[#allocation4 + $0xe8] sm:$0xff]  ;;  %v125_v15 = vld [vmem:[#allocation4 + $0x60] sm:$0xff]  ;;  %v124_v17 = vld [vmem:[#allocation4 + $0x58] sm:$0xff] }
  0x12   :  { %105 = vmatpush.msra.mxu1 %v56_v5  ;;  %150 = vmatpush.msra.mxu2 %v127_v7  ;;  %v141_v16 = vld [vmem:[#allocation4 + $0xe0] sm:$0xff]  ;;  %v140_v18 = vld [vmem:[#allocation4 + $0xd8] sm:$0xff]  ;;  %v123_v19 = vld [vmem:[#allocation4 + $0x50] sm:$0xff] }
  0x13   :  { %170 = vmatpush.msra.mxu3 %v143_v11  ;;  %86 = vmatpush.msra.mxu0 %v53_v9  ;;  %v139_v20 = vld [vmem:[#allocation4 + $0xd0] sm:$0xff]  ;;  %v122_v21 = vld [vmem:[#allocation4 + $0x48] sm:$0xff]  ;;  %v121_v23 = vld [vmem:[#allocation4 + $0x40] sm:$0xff] }
  0x14   :  { %106 = vmatpush.msra.mxu1 %v54_v10  ;;  %197 = vmatmul.msk.f32.vlgmr.msra.gmra.mxu0 %vm67_vm0, %v52_v12  ;;  %v138_v22 = vld [vmem:[#allocation4 + $0xc8] sm:$0xff]  ;;  %v137_v24 = vld [vmem:[#allocation4 + $0xc0] sm:$0xff]  ;;  %v120_v25 = vld [vmem:[#allocation4 + $0x38] sm:$0xff] }
  0x15   :  { %198 = vmatmul.msk.f32.vlgmr.msra.gmra.mxu1 %vm67_vm0, %v52_v12  ;;  %151 = vmatpush.msra.mxu2 %v126_v13  ;;  %v136_v26 = vld [vmem:[#allocation4 + $0xb8] sm:$0xff]  ;;  %v119_v27 = vld [vmem:[#allocation4 + $0x30] sm:$0xff]  ;;  %v118_v29 = vld [vmem:[#allocation4 + $0x28] sm:$0xff] }
  0x16   :  { %171 = vmatpush.msra.mxu3 %v142_v14  ;;  %v135_v28 = vld [vmem:[#allocation4 + $0xb0] sm:$0xff]  ;;  %v134_v30 = vld [vmem:[#allocation4 + $0xa8] sm:$0xff]  ;;  %v117_v31 = vld [vmem:[#allocation4 + $0x20] sm:$0xff] }
  0x17   :  { %152 = vmatpush.msra.mxu2 %v125_v15  ;;  %v133_v32 = vld [vmem:[#allocation4 + $0xa0] sm:$0xff]  ;;  %v116_v33 = vld [vmem:[#allocation4 + $0x18] sm:$0xff]  ;;  %v115_v34 = vld [vmem:[#allocation4 + $0x10] sm:$0xff] }
  0x18   :  { %172 = vmatpush.msra.mxu3 %v141_v16  ;;  %v132_v35 = vld [vmem:[#allocation4 + $0x98] sm:$0xff]  ;;  %v114_v36 = vld [vmem:[#allocation4 + $0x8] sm:$0xff]  ;;  %v131_v37 = vld [vmem:[#allocation4 + $0x90] sm:$0xff] }
  0x19   :  { %153 = vmatpush.msra.mxu2 %v124_v17  ;;  %v113_v38 = vld [vmem:[#allocation4] sm:$0xff]  ;;  %v130_v39 = vld [vmem:[#allocation4 + $0x88] sm:$0xff] }
  0x1a   :  { %173 = vmatpush.msra.mxu3 %v140_v18  ;;  %v129_v40 = vld [vmem:[#allocation4 + $0x80] sm:$0xff] }
  0x1b   :  { %154 = vmatpush.msra.mxu2 %v123_v19  ;;  %v61_v41 = vld [vmem:[%s316_s2] sm:$0x3] }
  0x1c   :  { %174 = vmatpush.msra.mxu3 %v139_v20  ;;  %v63_v42 = vperm.slane %v61_v41, 0  ;;  %v64_v43 = vperm.slane %v61_v41, 1  ;;  %v205_v50 = vld [vmem:[%s318_s4] ss:$0 sm:$0xff] }
  0x1d   :  { %155 = vmatpush.msra.mxu2 %v122_v21 }
  0x1e   :  { %175 = vmatpush.msra.mxu3 %v138_v22 }
  0x1f   :  { %156 = vmatpush.msra.mxu2 %v121_v23 }
  0x20   :  { %176 = vmatpush.msra.mxu3 %v137_v24 }
  0x21   :  { %157 = vmatpush.msra.mxu2 %v120_v25 }
  0x22   :  { %177 = vmatpush.msra.mxu3 %v136_v26 }
  0x23   :  { %158 = vmatpush.msra.mxu2 %v119_v27 }
  0x24   :  { %178 = vmatpush.msra.mxu3 %v135_v28 }
  0x25   :  { %159 = vmatpush.msra.mxu2 %v118_v29 }
  0x26   :  { %179 = vmatpush.msra.mxu3 %v134_v30 }
  0x27   :  { %160 = vmatpush.msra.mxu2 %v117_v31 }
  0x28   :  { %180 = vmatpush.msra.mxu3 %v133_v32 }
  0x29   :  { %161 = vmatpush.msra.mxu2 %v116_v33 }
  0x2a   :  { %181 = vmatpush.msra.mxu3 %v132_v35 }
  0x2b   :  { %162 = vmatpush.msra.mxu2 %v115_v34 }
  0x2c   :  { %182 = vmatpush.msra.mxu3 %v131_v37 }
  0x2d   :  { %163 = vmatpush.msra.mxu2 %v114_v36 }
  0x2e   :  { %183 = vmatpush.msra.mxu3 %v130_v39 }
  0x2f   :  { %164 = vmatpush.msra.mxu2 %v113_v38 }
  0x30   :  { %184 = vmatpush.msra.mxu3 %v129_v40 }
  0x91   :  { %v88_v44 = vpop.f32.mrf.mxu0 }
  0x92   :  { %v108_v45 = vpop.f32.mrf.mxu1  ;;  %v89_v46 = vadd.f32 %v88_v44, %v63_v42 }
  0x93   :  { %v109_v47 = vadd.f32 %v108_v45, %v64_v43 }
  0x94   :  { %v111_v48 = vmax.f32 %v89_v46, 0.0 }
  0x95   :  { %v112_v49 = vmax.f32 %v109_v47, 0.0 }
  0x96   :  { %165 = vmatmul.f32.vlgmr.msra.gmra.mxu2 %v111_v48 }
  0x97   :  { %185 = vmatmul.f32.vlgmr.msra.gmra.mxu3 %v112_v49 }
 0x119   :  { %v166_v51 = vpop.f32.mrf.mxu2 }
 0x11a   :  { %v186_v52 = vpop.f32.mrf.mxu3  ;;  %v167_v53 = vadd.f32 %v205_v50, %v166_v51 }
 0x11c   :  { %v187_v54 = vadd.f32 %v186_v52, %v167_v53 }
 0x11e   :  { %206 = vtanh.f32 %v187_v54 }
 0x124   :  { %v207_v55 = vpop.eup %206 }
 0x125   :  { %190 = vst [vmem:[%s319_s5] sm:$0xff] %v207_v55 }
 0x126   :  { %195 = vsyncpa [#allocation3], 1 }
 0x127   :  { %196 = vsyncpa [#allocation5], 1 }

</bundles_post_ra>
